<compile_context>
chip_gen: v6e
topology: v6e:2x2x1
jax: 0.10.0
libtpu: 0.0.40
codegen_flags: <defaults>
</compile_context>

<pallas_src>
import jax
import jax.numpy as jnp
from jax import lax
from jax.experimental import pallas as pl
from jax.experimental.pallas import tpu as pltpu


def _round_up(x, m):
    return ((x + m - 1) // m) * m


def _make_qnet_kernel(num_layers, compute_dtype):
    """Fused MLP kernel.

    Ref order:
      state (tb, Ds) f32, action (tb, Da) f32,
      W1_s (Ds, H1) bf16, W1_a (Da, H1) bf16, b1 (1, H1) f32,
      (W_i (H, H'), b_i (1, H')) for hidden layers i = 2 .. L-1,
      W_L^T (1, H) bf16, b_L (1, 1) f32,
      out (1, tb) f32.

    Layer 1 is the split-feature equivalent of concat(state, action) @ W1
    (no concatenated activation ever materialized).  Hidden layers run on the
    MXU with bf16 operands and f32 accumulation, ReLU, re-cast to bf16.  The
    final layer is computed transposed (q^T = W_L^T @ h^T) so the output tile
    is lane-dense (1, tb).
    """

    def kernel(*refs):
        s_ref, a_ref = refs[0], refs[1]
        o_ref = refs[-1]
        p = refs[2:-1]

        # Layer 1: split dot over the (state | action) feature blocks.
        acc = (
            jnp.dot(s_ref[...].astype(compute_dtype), p[0][...],
                    preferred_element_type=jnp.float32)
            + jnp.dot(a_ref[...].astype(compute_dtype), p[1][...],
                      preferred_element_type=jnp.float32)
            + p[2][...]
        )
        h = jnp.maximum(acc, 0.0).astype(compute_dtype)

        # Hidden layers 2 .. L-1.
        for layer in range(1, num_layers - 1):
            w = p[2 * layer + 1][...]
            b = p[2 * layer + 2][...]
            acc = jnp.dot(h, w, preferred_element_type=jnp.float32) + b
            h = jnp.maximum(acc, 0.0).astype(compute_dtype)

        # Final layer, lane-dense: q^T = W_L^T @ h^T -> (1, tb).
        w_last_t = p[-2][...]   # (1, H) bf16 (pre-transposed in the wrapper)
        b_last = p[-1][...]     # (1, 1) f32
        q_t = lax.dot_general(
            w_last_t, h,
            dimension_numbers=(((1,), (1,)), ((), ())),
            preferred_element_type=jnp.float32,
        )
        o_ref[...] = (q_t + b_last).astype(o_ref.dtype)

    return kernel


def prepare_qnetwork_params(params, compute_dtype=jnp.bfloat16):
    """One-time param prep (hoisted out of the per-forward path).

    Weights are cast to the MXU compute dtype (bf16 by default); biases stay
    f32 since they are added to the f32 accumulator.
    """
    return [(w.astype(compute_dtype), b.astype(jnp.float32)) for w, b in params]


def qnetwork_forward(state, action, params, *, block_b=1024):
    """Fused QNetwork forward.

    state:  (B, input_dims) f32
    action: (B, num_actions) f32
    params: list of (W, b) from prepare_qnetwork_params; W: (in, out) bf16,
            b: (1, out) f32; first W has in == input_dims + num_actions.
    Returns q_value: (B, 1) f32.
    """
    assert block_b % 128 == 0, "block_b must be a multiple of 128"
    num_layers = len(params)
    assert num_layers >= 2, "QNetwork kernel expects at least one hidden layer"
    compute_dtype = params[0][0].dtype

    B, input_dims = state.shape
    _, num_actions = action.shape
    assert params[0][0].shape[0] == input_dims + num_actions

    # Batch tile: multiple of 128 (lane-dense output).  When B is large, cap
    # the tile so the grid has >= 2 steps so the "parallel" axis can span both
    # v7x TensorCores.
    tb = min(block_b, max(128, _round_up(pl.cdiv(B, 2), 128)))
    n_steps = pl.cdiv(B, tb)
    b_pad = n_steps * tb
    if b_pad != B:
        # Only the ragged remainder is padded (no-op when B % tb == 0).
        state = jnp.pad(state, ((0, b_pad - B), (0, 0)))
        action = jnp.pad(action, ((0, b_pad - B), (0, 0)))
    grid = (n_steps,)

    # Layer-1 weight is split along its input rows (state part / action part)
    # and the last-layer weight is passed transposed; both are tiny (<= a few
    # KB) one-time reshapes outside the kernel.
    w1, b1 = params[0]
    weight_arrays = [w1[:input_dims, :], w1[input_dims:, :], b1]
    for w, b in params[1:-1]:
        weight_arrays.extend([w, b])
    w_last, b_last = params[-1]
    weight_arrays.extend([w_last.T, b_last])   # (1, H), (1, 1)

    in_specs = [
        pl.BlockSpec((tb, input_dims), lambda i: (i, 0)),
        pl.BlockSpec((tb, num_actions), lambda i: (i, 0)),
    ]
    for arr in weight_arrays:
        in_specs.append(pl.BlockSpec(arr.shape, lambda i: (0, 0)))  # resident

    out_specs = pl.BlockSpec((1, tb), lambda i: (0, i))
    out_shape = jax.ShapeDtypeStruct((1, b_pad), jnp.float32)

    # Advisory cost estimate so XLA schedules around the custom call.
    flops = 0
    bytes_accessed = (state.size * state.dtype.itemsize
                      + action.size * action.dtype.itemsize
                      + b_pad * 4)
    for w, b in params:
        flops += 2 * b_pad * w.shape[0] * w.shape[1]
        bytes_accessed += w.size * w.dtype.itemsize + b.size * b.dtype.itemsize
    cost = pl.CostEstimate(
        flops=int(flops), transcendentals=0, bytes_accessed=int(bytes_accessed)
    )

    q_t = pl.pallas_call(
        _make_qnet_kernel(num_layers, compute_dtype),
        out_shape=out_shape,
        grid=grid,
        in_specs=in_specs,
        out_specs=out_specs,
        compiler_params=pltpu.CompilerParams(
            # Batch axis is embarrassingly parallel -> lets v7x shard grid
            # steps across both TensorCores (no-op on single-TC v5e/v6e).
            dimension_semantics=("parallel",),
        ),
        cost_estimate=cost,
    )(state, action, *weight_arrays)

    # (1, b_pad) lane-dense output -> (B, 1); padded rows are dropped.
    return q_t[0, :B].reshape(B, 1)


def init_qnetwork_params(key, input_dims, num_actions, hidden_units):
    """Deterministic f32 parameter init mirroring the module's layer sizes.

    units = [input_dims + num_actions] + hidden_units + [1]
    """
    units = [input_dims + num_actions] + list(hidden_units) + [1]
    params = []
    for i in range(len(units) - 1):
        fan_in, fan_out = units[i], units[i + 1]
        key, wk, bk = jax.random.split(key, 3)
        scale = jnp.sqrt(2.0 / fan_in)  # Kaiming/He-style scaling
        w = jax.random.normal(wk, (fan_in, fan_out), dtype=jnp.float32) * scale
        b = jax.random.normal(bk, (1, fan_out), dtype=jnp.float32) * 0.01
        params.append((w, b))
    return params


def qnetwork_ref_f32(state, action, params_f32):
    """Pure-JAX f32 reference (matches the PyTorch module semantics)."""
    x = jnp.concatenate([state, action], axis=1)
    for i, (w, b) in enumerate(params_f32):
        x = x @ w + b
        if i < len(params_f32) - 1:
            x = jnp.maximum(x, 0.0)
    return x


def qnetwork_ref_mixed(state, action, params):
    """Pure-JAX reference mirroring the kernel's bf16-in / f32-accumulate recipe."""
    cd = params[0][0].dtype
    x = jnp.concatenate([state, action], axis=1).astype(cd)
    for i, (w, b) in enumerate(params):
        x = jnp.dot(x, w, preferred_element_type=jnp.float32) + b
        if i < len(params) - 1:
            x = jnp.maximum(x, 0.0).astype(cd)
    return x


if __name__ == "__main__":
    # Small shapes consistent with the module's forward:
    #   state: (B, input_dims), action: (B, num_actions)
    B = 8
    input_dims = 16
    num_actions = 4
    hidden_units = [32, 32]

    key = jax.random.PRNGKey(0)
    key, sk, ak, pk = jax.random.split(key, 4)
    state = jax.random.normal(sk, (B, input_dims), dtype=jnp.float32)
    action = jax.random.normal(ak, (B, num_actions), dtype=jnp.float32)

    params_f32 = init_qnetwork_params(pk, input_dims, num_actions, hidden_units)
    params = prepare_qnetwork_params(params_f32)  # hoisted: cast once, reuse

    # --- single-tile path (B < 128 -> one 128-row tile, padded rows dropped) ---
    q = qnetwork_forward(state, action, params)
    q = jax.block_until_ready(q)
    assert q.shape == (B, 1), q.shape

    # Tight check against a reference using the same mixed-precision recipe.
    q_mixed = qnetwork_ref_mixed(state, action, params)
    assert jnp.allclose(q, q_mixed, atol=1e-3, rtol=1e-3), "mismatch vs mixed ref"

    # Loose check against the full-f32 module semantics (bf16 MXU inputs).
    q_f32 = qnetwork_ref_f32(state, action, params_f32)
    assert jnp.allclose(q, q_f32, atol=1e-1, rtol=1e-1), "mismatch vs f32 ref"

    # --- multi-tile grid path (exercises batch tiling + ragged padding) ---
    key, sk2, ak2 = jax.random.split(key, 3)
    B2 = 300
    state2 = jax.random.normal(sk2, (B2, input_dims), dtype=jnp.float32)
    action2 = jax.random.normal(ak2, (B2, num_actions), dtype=jnp.float32)
    q2 = qnetwork_forward(state2, action2, params, block_b=128)  # grid of 3 tiles
    q2 = jax.block_until_ready(q2)
    assert q2.shape == (B2, 1), q2.shape
    q2_mixed = qnetwork_ref_mixed(state2, action2, params)
    assert jnp.allclose(q2, q2_mixed, atol=1e-3, rtol=1e-3), "tiled mismatch"

    print("KERNEL_OK")
</pallas_src>

<mosaic_0001>
module attributes {stable_mosaic.version = 11 : i64} {
  func.func @kernel(%arg0: i32, %arg1: memref<128x16xf32, #tpu.memory_space<vmem>>, %arg2: memref<128x4xf32, #tpu.memory_space<vmem>>, %arg3: memref<16x32xbf16, #tpu.memory_space<vmem>>, %arg4: memref<4x32xbf16, #tpu.memory_space<vmem>>, %arg5: memref<1x32xf32, #tpu.memory_space<vmem>>, %arg6: memref<32x32xbf16, #tpu.memory_space<vmem>>, %arg7: memref<1x32xf32, #tpu.memory_space<vmem>>, %arg8: memref<1x32xbf16, #tpu.memory_space<vmem>>, %arg9: memref<1x1xf32, #tpu.memory_space<vmem>>, %arg10: memref<1x128xf32, #tpu.memory_space<vmem>>) attributes {dimension_semantics = [#tpu.dimension_semantics<parallel>], iteration_bounds = array<i64: 1>, scalar_prefetch = 0 : i64, scratch_operands = 0 : i64, tpu.core_type = #tpu.core_type<tc>, window_params = [{transform_indices = @transform_0, window_bounds = array<i64: 128, 16>}, {transform_indices = @transform_1, window_bounds = array<i64: 128, 4>}, {pipeline_mode = #tpu.pipeline_mode<synchronous>, transform_indices = @transform_2, window_bounds = array<i64: 16, 32>}, {pipeline_mode = #tpu.pipeline_mode<synchronous>, transform_indices = @transform_3, window_bounds = array<i64: 4, 32>}, {pipeline_mode = #tpu.pipeline_mode<synchronous>, transform_indices = @transform_4, window_bounds = array<i64: 1, 32>}, {pipeline_mode = #tpu.pipeline_mode<synchronous>, transform_indices = @transform_5, window_bounds = array<i64: 32, 32>}, {pipeline_mode = #tpu.pipeline_mode<synchronous>, transform_indices = @transform_6, window_bounds = array<i64: 1, 32>}, {pipeline_mode = #tpu.pipeline_mode<synchronous>, transform_indices = @transform_7, window_bounds = array<i64: 1, 32>}, {pipeline_mode = #tpu.pipeline_mode<synchronous>, transform_indices = @transform_8, window_bounds = array<i64: 1, 1>}, {transform_indices = @transform_9, window_bounds = array<i64: 1, 128>}]} {
    %c0 = arith.constant 0 : index
    %c0_0 = arith.constant 0 : index
    %0 = vector.load %arg1[%c0, %c0_0] : memref<128x16xf32, #tpu.memory_space<vmem>>, vector<128x16xf32>
    %1 = arith.truncf %0 : vector<128x16xf32> to vector<128x16xbf16>
    %c0_1 = arith.constant 0 : index
    %c0_2 = arith.constant 0 : index
    %2 = vector.load %arg3[%c0_1, %c0_2] : memref<16x32xbf16, #tpu.memory_space<vmem>>, vector<16x32xbf16>
    %cst = arith.constant dense<0.000000e+00> : vector<128x32xf32>
    %3 = tpu.matmul %1, %2, %cst {dimension_numbers = #tpu.dot_dimension_numbers<[1], [0], [0], [1], [0, 0, 1, 1], [], []>} : vector<128x16xbf16>, vector<16x32xbf16>, vector<128x32xf32> -> vector<128x32xf32>
    %c0_3 = arith.constant 0 : index
    %c0_4 = arith.constant 0 : index
    %4 = vector.load %arg2[%c0_3, %c0_4] : memref<128x4xf32, #tpu.memory_space<vmem>>, vector<128x4xf32>
    %5 = arith.truncf %4 : vector<128x4xf32> to vector<128x4xbf16>
    %c0_5 = arith.constant 0 : index
    %c0_6 = arith.constant 0 : index
    %6 = vector.load %arg4[%c0_5, %c0_6] : memref<4x32xbf16, #tpu.memory_space<vmem>>, vector<4x32xbf16>
    %cst_7 = arith.constant dense<0.000000e+00> : vector<128x32xf32>
    %7 = tpu.matmul %5, %6, %cst_7 {dimension_numbers = #tpu.dot_dimension_numbers<[1], [0], [0], [1], [0, 0, 1, 1], [], []>} : vector<128x4xbf16>, vector<4x32xbf16>, vector<128x32xf32> -> vector<128x32xf32>
    %8 = arith.addf %3, %7 : vector<128x32xf32>
    %c0_8 = arith.constant 0 : index
    %c0_9 = arith.constant 0 : index
    %9 = vector.load %arg5[%c0_8, %c0_9] : memref<1x32xf32, #tpu.memory_space<vmem>>, vector<1x32xf32>
    %10 = vector.broadcast %9 : vector<1x32xf32> to vector<128x32xf32>
    %11 = arith.addf %8, %10 : vector<128x32xf32>
    %cst_10 = arith.constant 0.000000e+00 : f32
    %12 = vector.broadcast %cst_10 : f32 to vector<128x32xf32>
    %13 = arith.maximumf %11, %12 : vector<128x32xf32>
    %14 = arith.truncf %13 : vector<128x32xf32> to vector<128x32xbf16>
    %c0_11 = arith.constant 0 : index
    %c0_12 = arith.constant 0 : index
    %15 = vector.load %arg6[%c0_11, %c0_12] : memref<32x32xbf16, #tpu.memory_space<vmem>>, vector<32x32xbf16>
    %c0_13 = arith.constant 0 : index
    %c0_14 = arith.constant 0 : index
    %16 = vector.load %arg7[%c0_13, %c0_14] : memref<1x32xf32, #tpu.memory_space<vmem>>, vector<1x32xf32>
    %cst_15 = arith.constant dense<0.000000e+00> : vector<128x32xf32>
    %17 = tpu.matmul %14, %15, %cst_15 {dimension_numbers = #tpu.dot_dimension_numbers<[1], [0], [0], [1], [0, 0, 1, 1], [], []>} : vector<128x32xbf16>, vector<32x32xbf16>, vector<128x32xf32> -> vector<128x32xf32>
    %18 = vector.broadcast %16 : vector<1x32xf32> to vector<128x32xf32>
    %19 = arith.addf %17, %18 : vector<128x32xf32>
    %cst_16 = arith.constant 0.000000e+00 : f32
    %20 = vector.broadcast %cst_16 : f32 to vector<128x32xf32>
    %21 = arith.maximumf %19, %20 : vector<128x32xf32>
    %22 = arith.truncf %21 : vector<128x32xf32> to vector<128x32xbf16>
    %c0_17 = arith.constant 0 : index
    %c0_18 = arith.constant 0 : index
    %23 = vector.load %arg8[%c0_17, %c0_18] : memref<1x32xbf16, #tpu.memory_space<vmem>>, vector<1x32xbf16>
    %c0_19 = arith.constant 0 : index
    %c0_20 = arith.constant 0 : index
    %24 = vector.load %arg9[%c0_19, %c0_20] : memref<1x1xf32, #tpu.memory_space<vmem>>, vector<1x1xf32>
    %cst_21 = arith.constant dense<0.000000e+00> : vector<1x128xf32>
    %25 = tpu.matmul %23, %22, %cst_21 {dimension_numbers = #tpu.dot_dimension_numbers<[1], [1], [0], [0], [0, 0, 1, 0], [], []>} : vector<1x32xbf16>, vector<128x32xbf16>, vector<1x128xf32> -> vector<1x128xf32>
    %26 = vector.broadcast %24 : vector<1x1xf32> to vector<1x128xf32>
    %27 = arith.addf %25, %26 : vector<1x128xf32>
    %c0_22 = arith.constant 0 : index
    %c0_23 = arith.constant 0 : index
    %28 = vector.load %arg10[%c0_22, %c0_23] : memref<1x128xf32, #tpu.memory_space<vmem>>, vector<1x128xf32>
    tpu.vector_store %arg10[%c0_22, %c0_23], %27 {strides = array<i32>} : memref<1x128xf32, #tpu.memory_space<vmem>>, vector<1x128xf32>,
    return
  }
  func.func @transform_0(%arg0: i32) -> (i32, i32) {
    %c0_i32 = arith.constant 0 : i32
    %c0_i32_0 = arith.constant 0 : i32
    return %arg0, %c0_i32 : i32, i32
  }
  func.func @transform_1(%arg0: i32) -> (i32, i32) {
    %c0_i32 = arith.constant 0 : i32
    %c0_i32_0 = arith.constant 0 : i32
    return %arg0, %c0_i32 : i32, i32
  }
  func.func @transform_2(%arg0: i32) -> (i32, i32) {
    %c0_i32 = arith.constant 0 : i32
    %c0_i32_0 = arith.constant 0 : i32
    %c0_i32_1 = arith.constant 0 : i32
    return %c0_i32, %c0_i32_0 : i32, i32
  }
  func.func @transform_3(%arg0: i32) -> (i32, i32) {
    %c0_i32 = arith.constant 0 : i32
    %c0_i32_0 = arith.constant 0 : i32
    %c0_i32_1 = arith.constant 0 : i32
    return %c0_i32, %c0_i32_0 : i32, i32
  }
  func.func @transform_4(%arg0: i32) -> (i32, i32) {
    %c0_i32 = arith.constant 0 : i32
    %c0_i32_0 = arith.constant 0 : i32
    %c0_i32_1 = arith.constant 0 : i32
    return %c0_i32, %c0_i32_0 : i32, i32
  }
  func.func @transform_5(%arg0: i32) -> (i32, i32) {
    %c0_i32 = arith.constant 0 : i32
    %c0_i32_0 = arith.constant 0 : i32
    %c0_i32_1 = arith.constant 0 : i32
    return %c0_i32, %c0_i32_0 : i32, i32
  }
  func.func @transform_6(%arg0: i32) -> (i32, i32) {
    %c0_i32 = arith.constant 0 : i32
    %c0_i32_0 = arith.constant 0 : i32
    %c0_i32_1 = arith.constant 0 : i32
    return %c0_i32, %c0_i32_0 : i32, i32
  }
  func.func @transform_7(%arg0: i32) -> (i32, i32) {
    %c0_i32 = arith.constant 0 : i32
    %c0_i32_0 = arith.constant 0 : i32
    %c0_i32_1 = arith.constant 0 : i32
    return %c0_i32, %c0_i32_0 : i32, i32
  }
  func.func @transform_8(%arg0: i32) -> (i32, i32) {
    %c0_i32 = arith.constant 0 : i32
    %c0_i32_0 = arith.constant 0 : i32
    %c0_i32_1 = arith.constant 0 : i32
    return %c0_i32, %c0_i32_0 : i32, i32
  }
  func.func @transform_9(%arg0: i32) -> (i32, i32) {
    %c0_i32 = arith.constant 0 : i32
    %c0_i32_0 = arith.constant 0 : i32
    return %c0_i32, %arg0 : i32, i32
  }
}

</mosaic_0001>

<bundles_post_ra>
// kernel: tpu_custom_call.1
= control target key start
LH: loop header
LB: loop body
LE: loop exit
PB: predicated region body
PF: predicated region fallthrough
CT: control target
= control target key end

     0   :  { %s1079_s0 = inlined_call_operand.vmem [shape: f32[128,16], index: 0, kind: input, shape index: {}]   ;;  %s1080_s1 = inlined_call_operand.vmem [shape: f32[128,4], index: 1, kind: input, shape index: {}]   ;;  %s1081_s2 = inlined_call_operand.vmem [shape: bf16[16,32], index: 2, kind: input, shape index: {}]   ;;  %s1082_s3 = inlined_call_operand.vmem [shape: bf16[4,32], index: 3, kind: input, shape index: {}]   ;;  %s1083_s4 = inlined_call_operand.vmem [shape: f32[1,32], index: 4, kind: input, shape index: {}]   ;;  %s1084_s5 = inlined_call_operand.vmem [shape: bf16[32,32], index: 5, kind: input, shape index: {}]   ;;  %s1085_s6 = inlined_call_operand.vmem [shape: f32[1,32], index: 6, kind: input, shape index: {}]   ;;  %s1086_s7 = inlined_call_operand.vmem [shape: bf16[1,32], index: 7, kind: input, shape index: {}]   ;;  %s1087_s8 = inlined_call_operand.<no memory space> [shape: f32[1,1], index: 8, kind: input, shape index: {}]   ;;  %s1088_s9 = inlined_call_operand.hbm [shape: f32[1,128], index: 9, kind: output, shape index: {}]  }
   0x1   :  { %v14_v0 = vstv %s1087_s8 }
   0x2   :  { %15 = vst [vmem:[#allocation2] sm:$0x1] %v14_v0 }
   0x3   :  { %v86_v1 = vld [vmem:[%s1082_s3] sm:$0x3]  ;;  %vm112_vm0 = vcmask 1041408   ;;  %v63_v5 = vld [vmem:[%s1080_s1 + $0x8] sm:$0xff]  ;;  %vm87_vm1 = vcmask 31744   ;;  %v64_v7 = vld [vmem:[%s1080_s1 + $0x10] sm:$0xff] }
   0x4   :  { %v799_v2 = vld [vmem:[%s1081_s2] sm:$0xff]   ;;  %793 = vmatprep.subr.msk.bf16.mxu0 %vm112_vm0, %v86_v1  ;;  %v114_v3 = vsel %vm112_vm0, %v86_v1, 0  ;;  %v65_v8 = vld [vmem:[%s1080_s1 + $0x18] sm:$0xff]  ;;  %v37_v11 = vld [vmem:[%s1079_s0 + $0x8] sm:$0xff]  ;;  %vm219_vm2 = vcmask 130048  }
   0x5   :  { %v62_v4 = vld [vmem:[%s1080_s1] sm:$0xff]  ;;  %718 = vmatpush3.bf16.msra.mxu0 %v114_v3  ;;  %735 = vmatprep.subr.bf16.mxu1 %v799_v2  ;;  %v79_v10 = vpack.c.bf16 %v65_v8, %v64_v7  ;;  %v38_v12 = vld [vmem:[%s1079_s0 + $0x10] sm:$0xff]  ;;  %v39_v13 = vld [vmem:[%s1079_s0 + $0x18] sm:$0xff] }
   0x6   :  { %v78_v6 = vpack.c.bf16 %v63_v5, %v62_v4  ;;  %v36_v9 = vld [vmem:[%s1079_s0] sm:$0xff]  ;;  %736 = vmatpush3.bf16.msra.mxu1 %v799_v2  ;;  %v53_v15 = vpack.c.bf16 %v39_v13, %v38_v12  ;;  %v67_v17 = vld [vmem:[%s1080_s1 + $0x28] sm:$0xff]  ;;  %v68_v21 = vld [vmem:[%s1080_s1 + $0x30] sm:$0xff] }
   0x7   :  { %v52_v14 = vpack.c.bf16 %v37_v11, %v36_v9  ;;  %v66_v16 = vld [vmem:[%s1080_s1 + $0x20] sm:$0xff]  ;;  %v41_v20 = vld [vmem:[%s1079_s0 + $0x28] sm:$0xff]  ;;  %v69_v22 = vld [vmem:[%s1080_s1 + $0x38] sm:$0xff] }
   0x8   :  { %719 = vmatprep.mubr.msk.bf16.mxu0 %vm87_vm1, %v78_v6  ;;  %v80_v18 = vpack.c.bf16 %v67_v17, %v66_v16  ;;  %v40_v19 = vld [vmem:[%s1079_s0 + $0x20] sm:$0xff]  ;;  %v71_v25 = vld [vmem:[%s1080_s1 + $0x48] sm:$0xff]  ;;  %v42_v26 = vld [vmem:[%s1079_s0 + $0x30] sm:$0xff]  ;;  %v81_v28 = vpack.c.bf16 %v69_v22, %v68_v21 }
   0x9   :  { %720 = vmatmul.mubr.msk.bf16.vlgmr.msra.gmra.mxu0 %vm87_vm1, %v79_v10  ;;  %737 = vmatprep.mubr.msk.bf16.mxu1 %vm219_vm2, %v52_v14  ;;  %v54_v23 = vpack.c.bf16 %v41_v20, %v40_v19  ;;  %v70_v24 = vld [vmem:[%s1080_s1 + $0x40] sm:$0xff]  ;;  %v43_v27 = vld [vmem:[%s1079_s0 + $0x38] sm:$0xff]  ;;  %v45_v30 = vld [vmem:[%s1079_s0 + $0x48] sm:$0xff] }
   0xa   :  { %738 = vmatmul.mubr.msk.bf16.vlgmr.msra.gmra.mxu1 %vm219_vm2, %v53_v15  ;;  %723 = vmatprep.mubr.msk.bf16.mxu0 %vm87_vm1, %v80_v18  ;;  %v44_v29 = vld [vmem:[%s1079_s0 + $0x40] sm:$0xff]  ;;  %v82_v31 = vpack.c.bf16 %v71_v25, %v70_v24  ;;  %v55_v32 = vpack.c.bf16 %v43_v27, %v42_v26  ;;  %v800_v34 = vld [vmem:[%s1084_s5 + $0x8] sm:$0xff]  }
   0xb   :  { %741 = vmatprep.mubr.msk.bf16.mxu1 %vm219_vm2, %v54_v23  ;;  %v56_v33 = vpack.c.bf16 %v45_v30, %v44_v29 }
  0x11   :  { %724 = vmatmul.mubr.msk.bf16.gmra.mxu0 %vm87_vm1, %v81_v28 }
  0x12   :  { %16 = vsyncpa [#allocation4], 0  ;;  %727 = vmatprep.mubr.msk.bf16.mxu0 %vm87_vm1, %v82_v31  ;;  %v72_v35 = vld [vmem:[%s1080_s1 + $0x50] sm:$0xff]  ;;  %v73_v36 = vld [vmem:[%s1080_s1 + $0x58] sm:$0xff]  ;;  %753 = vmatprep.subr.bf16.mxu0 %v800_v34  ;;  %vm411_vm3 = vcmask 261120   ;;  %vm825_vm4 = vmmov 0  }
  0x13   :  { %742 = vmatmul.mubr.msk.bf16.gmra.mxu1 %vm219_vm2, %v55_v32  ;;  %v74_v37 = vld [vmem:[%s1080_s1 + $0x60] sm:$0xff]  ;;  %v75_v38 = vld [vmem:[%s1080_s1 + $0x68] sm:$0xff]  ;;  %754 = vmatpush3.bf16.msra.mxu0 %v800_v34  ;;  %v46_v39 = vld [vmem:[%s1079_s0 + $0x50] sm:$0xff]  ;;  %v83_v41 = vpack.c.bf16 %v73_v36, %v72_v35  ;;  %s827_s12 = smov [#allocation3]  }
  0x14   :  { %745 = vmatprep.mubr.msk.bf16.mxu1 %vm219_vm2, %v56_v33  ;;  %v47_v40 = vld [vmem:[%s1079_s0 + $0x58] sm:$0xff]  ;;  %v48_v42 = vld [vmem:[%s1079_s0 + $0x60] sm:$0xff]  ;;  %v49_v43 = vld [vmem:[%s1079_s0 + $0x68] sm:$0xff]  ;;  %v84_v44 = vpack.c.bf16 %v75_v38, %v74_v37  ;;  %s642_s13 = sshll.u32 %s827_s12, 4  ;;  %s643_s13 = int_to_ptr.vmem [resolvable:$true] %s642_s13 }
  0x15   :  { %v57_v45 = vpack.c.bf16 %v47_v40, %v46_v39  ;;  %v58_v46 = vpack.c.bf16 %v49_v43, %v48_v42  ;;  %v76_v47 = vld [vmem:[%s1080_s1 + $0x70] sm:$0xff]  ;;  %v77_v48 = vld [vmem:[%s1080_s1 + $0x78] sm:$0xff]  ;;  %v801_v53 = vld [vmem:[%s1084_s5] sm:$0xff]   ;;  %s802_s14 = scalar_lea.vmem %s643_s13, 16  ;;  %s806_s15 = scalar_lea.vmem %s643_s13, 32 }
  0x16   :  { %v50_v49 = vld [vmem:[%s1079_s0 + $0x70] sm:$0xff]  ;;  %v51_v50 = vld [vmem:[%s1079_s0 + $0x78] sm:$0xff]  ;;  %v85_v51 = vpack.c.bf16 %v77_v48, %v76_v47  ;;  %755 = vmatprep.subr.bf16.mxu0 %v801_v53  ;;  %v1008_v63 = vld [vmem:[%s1083_s4] ss:$0 sm:$0xff]  ;;  %p803_p0 = scmp.ne.s32.totalorder %s643_s13, %s802_s14  ;;  %p807_p1 = scmp.lt.s32.totalorder %s643_s13, %s643_s13 }
  0x17   :  { %v59_v52 = vpack.c.bf16 %v51_v50, %v50_v49  ;;  %756 = vmatpush3.bf16.msra.mxu0 %v801_v53  ;;  %p808_p2 = scmp.lt.s32.totalorder %s806_s15, %s802_s14 }
  0x19   :  { %728 = vmatmul.mubr.msk.bf16.gmra.mxu0 %vm87_vm1, %v83_v41  ;;  %p809_p3 = por %p808_p2, %p807_p1 }
  0x1a   :  { %731 = vmatprep.mubr.msk.bf16.mxu0 %vm87_vm1, %v84_v44 }
  0x1b   :  { %746 = vmatmul.mubr.msk.bf16.gmra.mxu1 %vm219_vm2, %v57_v45  ;;  %p810_p4 = pnand %p809_p3, %p803_p0 }
  0x1c   :  { %749 = vmatprep.mubr.msk.bf16.mxu1 %vm219_vm2, %v58_v46 }
  0x21   :  { %732 = vmatmul.mubr.msk.bf16.gmra.mxu0 %vm87_vm1, %v85_v51 }
  0x23   :  { %750 = vmatmul.mubr.msk.bf16.gmra.mxu1 %vm219_vm2, %v59_v52 }
  0xc9   :  { %v721_v54 = vpop.f32.mrf.mxu0 }
  0xca   :  { %v739_v56 = vpop.f32.mrf.mxu1 }
  0xcb   :  { %v150_v55 = vpop.f32.mrf.mxu0  ;;  %v287_v60 = vadd.f32 %v739_v56, %v721_v54 }
  0xcc   :  { %v278_v58 = vpop.f32.mrf.mxu1 }
  0xcd   :  { %v722_v57 = vpop.f32.mrf.mxu0  ;;  %v279_v59 = vadd.f32 %v278_v58, %v150_v55  ;;  %v350_v6 = vadd.f32 %v1008_v63, %v287_v60 }
  0xce   :  { %v740_v62 = vpop.f32.mrf.mxu1 }
  0xcf   :  { %v153_v61 = vpop.f32.mrf.mxu0  ;;  %v290_v0 = vadd.f32 %v740_v62, %v722_v57  ;;  %v348_v3 = vadd.f32 %v1008_v63, %v279_v59  ;;  %v366_v16 = vmax.f32 %v350_v6, 0.0 }
  0xd0   :  { %v281_v2 = vpop.f32.mrf.mxu1 }
  0xd1   :  { %v725_v1 = vpop.f32.mrf.mxu0  ;;  %v351_v4 = vadd.f32 %v1008_v63, %v290_v0  ;;  %v282_v5 = vadd.f32 %v281_v2, %v153_v61  ;;  %v364_v13 = vmax.f32 %v348_v3, 0.0 }
  0xd3   :  { %v166_v7 = vpop.f32.mrf.mxu0  ;;  %v743_v8 = vpop.f32.mrf.mxu1  ;;  %v349_v9 = vadd.f32 %v1008_v63, %v282_v5  ;;  %v367_v10 = vmax.f32 %v351_v4, 0.0 }
  0xd4   :  { %v303_v17 = vadd.f32 %v743_v8, %v725_v1 }
  0xd5   :  { %v726_v11 = vpop.f32.mrf.mxu0  ;;  %v294_v12 = vpop.f32.mrf.mxu1  ;;  %v365_v14 = vmax.f32 %v349_v9, 0.0  ;;  %v381_v22 = vpack.c.bf16 %v367_v10, %v366_v16  ;;  %v824_v16 = vmov 0.0  }
  0xd6   :  { %v295_v15 = vadd.f32 %v294_v12, %v166_v7  ;;  %v354_v28 = vadd.f32 %v1008_v63, %v303_v17  ;;  %773 = vmatprep.subr.bf16.mxu1 %v824_v16  ;;  %789 = vmatprep.mubr.msk.bf16.mxu1 %vm825_vm4, %v824_v16  ;;  %v558_v17 = vld [vmem:[#allocation2] sm:$0x1] }
  0xd7   :  { %v169_v18 = vpop.f32.mrf.mxu0  ;;  %v744_v19 = vpop.f32.mrf.mxu1  ;;  %v380_v20 = vpack.c.bf16 %v365_v14, %v364_v13 }
  0xd8   :  { %v306_v21 = vadd.f32 %v744_v19, %v726_v11  ;;  %v352_v25 = vadd.f32 %v1008_v63, %v295_v15  ;;  %v370_v38 = vmax.f32 %v354_v28, 0.0  ;;  %v1039_v19 = vld [vmem:[%s1085_s6] ss:$0 sm:$0xff] }
  0xd9   :  { %v729_v23 = vpop.f32.mrf.mxu0  ;;  %v297_v24 = vpop.f32.mrf.mxu1  ;;  %757 = vmatprep.mubr.msk.bf16.mxu0 %vm411_vm3, %v380_v20 }
  0xda   :  { %v355_v26 = vadd.f32 %v1008_v63, %v306_v21  ;;  %v298_v27 = vadd.f32 %v297_v24, %v169_v18  ;;  %758 = vmatmul.mubr.msk.bf16.vlgmr.msra.gmra.mxu0 %vm411_vm3, %v381_v22  ;;  %v368_v35 = vmax.f32 %v352_v25, 0.0  ;;  %v826_v18 = vmov 0  }
  0xdb   :  { %v182_v29 = vpop.f32.mrf.mxu0  ;;  %v747_v30 = vpop.f32.mrf.mxu1  ;;  %798 = vset.pattern.permute.xlu0 %v826_v18 }
  0xdc   :  { %v353_v31 = vadd.f32 %v1008_v63, %v298_v27  ;;  %v371_v32 = vmax.f32 %v355_v26, 0.0  ;;  %v319_v39 = vadd.f32 %v747_v30, %v729_v23  ;;  %561 = vperm.xlu0 %798, %v558_v17  }
  0xdd   :  { %v730_v33 = vpop.f32.mrf.mxu0  ;;  %v310_v34 = vpop.f32.mrf.mxu1 }
  0xde   :  { %v369_v36 = vmax.f32 %v353_v31, 0.0  ;;  %v311_v37 = vadd.f32 %v310_v34, %v182_v29  ;;  %v383_v44 = vpack.c.bf16 %v371_v32, %v370_v38  ;;  %v358_v50 = vadd.f32 %v1008_v63, %v319_v39 }
  0xdf   :  { %v185_v40 = vpop.f32.mrf.mxu0  ;;  %v748_v41 = vpop.f32.mrf.mxu1 }
  0xe0   :  { %v382_v42 = vpack.c.bf16 %v369_v36, %v368_v35  ;;  %v322_v43 = vadd.f32 %v748_v41, %v730_v33  ;;  %v356_v47 = vadd.f32 %v1008_v63, %v311_v37  ;;  %v374_v60 = vmax.f32 %v358_v50, 0.0 }
  0xe1   :  { %v733_v45 = vpop.f32.mrf.mxu0  ;;  %v313_v46 = vpop.f32.mrf.mxu1 }
  0xe2   :  { %v359_v48 = vadd.f32 %v1008_v63, %v322_v43  ;;  %v314_v49 = vadd.f32 %v313_v46, %v185_v40  ;;  %761 = vmatprep.mubr.msk.bf16.mxu0 %vm411_vm3, %v382_v42  ;;  %v372_v57 = vmax.f32 %v356_v47, 0.0 }
  0xe3   :  { %v198_v51 = vpop.f32.mrf.mxu0  ;;  %v751_v52 = vpop.f32.mrf.mxu1  ;;  %762 = vmatmul.mubr.msk.bf16.gmra.mxu0 %vm411_vm3, %v383_v44 }
  0xe4   :  { %v357_v53 = vadd.f32 %v1008_v63, %v314_v49  ;;  %v375_v54 = vmax.f32 %v359_v48, 0.0  ;;  %v335_v61 = vadd.f32 %v751_v52, %v733_v45 }
  0xe5   :  { %v734_v55 = vpop.f32.mrf.mxu0  ;;  %v326_v56 = vpop.f32.mrf.mxu1 }
  0xe6   :  { %v373_v58 = vmax.f32 %v357_v53, 0.0  ;;  %v327_v59 = vadd.f32 %v326_v56, %v198_v51  ;;  %v385_v3 = vpack.c.bf16 %v375_v54, %v374_v60  ;;  %v362_v8 = vadd.f32 %v1008_v63, %v335_v61 }
  0xe7   :  { %v201_v62 = vpop.f32.mrf.mxu0  ;;  %v752_v0 = vpop.f32.mrf.mxu1 }
  0xe8   :  { %v384_v1 = vpack.c.bf16 %v373_v58, %v372_v57  ;;  %v338_v2 = vadd.f32 %v752_v0, %v734_v55  ;;  %v360_v5 = vadd.f32 %v1008_v63, %v327_v59  ;;  %v378_v13 = vmax.f32 %v362_v8, 0.0 }
  0xe9   :  { %v329_v4 = vpop.f32.mrf.mxu1 }
  0xea   :  { %v363_v6 = vadd.f32 %v1008_v63, %v338_v2  ;;  %v330_v7 = vadd.f32 %v329_v4, %v201_v62  ;;  %765 = vmatprep.mubr.msk.bf16.mxu0 %vm411_vm3, %v384_v1  ;;  %v376_v11 = vmax.f32 %v360_v5, 0.0 }
  0xeb   :  { %766 = vmatmul.mubr.msk.bf16.gmra.mxu0 %vm411_vm3, %v385_v3 }
  0xec   :  { %v361_v9 = vadd.f32 %v1008_v63, %v330_v7  ;;  %v379_v10 = vmax.f32 %v363_v6, 0.0 }
  0xee   :  { %v377_v12 = vmax.f32 %v361_v9, 0.0  ;;  %v387_v15 = vpack.c.bf16 %v379_v10, %v378_v13 }
  0xf0   :  { %v386_v14 = vpack.c.bf16 %v377_v12, %v376_v11 }
  0xf2   :  { %769 = vmatprep.mubr.msk.bf16.mxu0 %vm411_vm3, %v386_v14 }
  0xf3   :  { %770 = vmatmul.mubr.msk.bf16.gmra.mxu0 %vm411_vm3, %v387_v15 }
 0x19a   :  { %v759_v63 = vpop.f32.mrf.mxu0 }
 0x19b   :  { %v479_v21 = vadd.f32 %v759_v63, %v1039_v19 }
 0x19c   :  { %v470_v20 = vpop.f32.mrf.mxu0 }
 0x19d   :  { %v471_v23 = vadd.f32 %v1039_v19, %v470_v20  ;;  %v535_v26 = vmax.f32 %v479_v21, 0.0  ;;  %v557_v20 = vld [vmem:[%s1086_s7] sm:$0x1]  ;;  %v564_v21 = vlaneseq }
 0x19e   :  { %v760_v22 = vpop.f32.mrf.mxu0 }
 0x19f   :  { %v482_v24 = vadd.f32 %v760_v22, %v1039_v19  ;;  %v533_v30 = vmax.f32 %v471_v23, 0.0  ;;  %v565_v22 = vshrl.u32 %v564_v21, 7 }
 0x1a0   :  { %v473_v25 = vpop.f32.mrf.mxu0 }
 0x1a1   :  { %v536_v27 = vmax.f32 %v482_v24, 0.0  ;;  %v474_v28 = vadd.f32 %v1039_v19, %v473_v25  ;;  %v566_v23 = vsub.s32 0, %v565_v22  ;;  %v562_v24 = vpop.permute.xlu0 %561 }
 0x1a3   :  { %v763_v29 = vpop.f32.mrf.mxu0  ;;  %v550_v31 = vpack.c.bf16 %v536_v27, %v535_v26  ;;  %v534_v32 = vmax.f32 %v474_v28, 0.0  ;;  %v567_v25 = vrot.slane %v562_v24, %v566_v23 }
 0x1a4   :  { %v495_v6 = vadd.f32 %v763_v29, %v1039_v19 }
 0x1a5   :  { %v486_v33 = vpop.f32.mrf.mxu0  ;;  %v549_v34 = vpack.c.bf16 %v534_v32, %v533_v30  ;;  %v575_v63 = vsel %vm411_vm3, %v550_v31, 0 }
 0x1a6   :  { %v539_v9 = vmax.f32 %v495_v6, 0.0  ;;  %v487_v12 = vadd.f32 %v1039_v19, %v486_v33 }
 0x1a7   :  { %v764_v35 = vpop.f32.mrf.mxu0 }
 0x1a8   :  { %v498_v4 = vadd.f32 %v764_v35, %v1039_v19  ;;  %v537_v15 = vmax.f32 %v487_v12, 0.0 }
 0x1a9   :  { %v489_v36 = vpop.f32.mrf.mxu0 }
 0x1aa   :  { %v540_v7 = vmax.f32 %v498_v4, 0.0  ;;  %v490_v11 = vadd.f32 %v1039_v19, %v489_v36 }
 0x1ab   :  { %v767_v37 = vpop.f32.mrf.mxu0 }
 0x1ac   :  { %v511_v57 = vadd.f32 %v767_v37, %v1039_v19  ;;  %v552_v10 = vpack.c.bf16 %v540_v7, %v539_v9  ;;  %v538_v13 = vmax.f32 %v490_v11, 0.0 }
 0x1ad   :  { %v502_v38 = vpop.f32.mrf.mxu0 }
 0x1ae   :  { %v543_v60 = vmax.f32 %v511_v57, 0.0  ;;  %v503_v0 = vadd.f32 %v1039_v19, %v502_v38  ;;  %v581_v14 = vsel %vm411_vm3, %v552_v10, 0  ;;  %v551_v17 = vpack.c.bf16 %v538_v13, %v537_v15 }
 0x1af   :  { %v768_v39 = vpop.f32.mrf.mxu0 }
 0x1b0   :  { %v514_v55 = vadd.f32 %v768_v39, %v1039_v19  ;;  %v541_v3 = vmax.f32 %v503_v0, 0.0  ;;  %v578_v18 = vsel %vm411_vm3, %v551_v17, 0 }
 0x1b1   :  { %v505_v40 = vpop.f32.mrf.mxu0 }
 0x1b2   :  { %v544_v58 = vmax.f32 %v514_v55, 0.0  ;;  %v506_v62 = vadd.f32 %v1039_v19, %v505_v40 }
 0x1b3   :  { %v771_v41 = vpop.f32.mrf.mxu0 }
 0x1b4   :  { %v527_v43 = vadd.f32 %v771_v41, %v1039_v19  ;;  %v554_v61 = vpack.c.bf16 %v544_v58, %v543_v60  ;;  %v542_v1 = vmax.f32 %v506_v62, 0.0 }
 0x1b5   :  { %v518_v42 = vpop.f32.mrf.mxu0 }
 0x1b6   :  { %v547_v47 = vmax.f32 %v527_v43, 0.0  ;;  %v519_v50 = vadd.f32 %v1039_v19, %v518_v42  ;;  %v587_v2 = vsel %vm411_vm3, %v554_v61, 0  ;;  %v553_v5 = vpack.c.bf16 %v542_v1, %v541_v3 }
 0x1b7   :  { %v772_v44 = vpop.f32.mrf.mxu0 }
 0x1b8   :  { %v530_v45 = vadd.f32 %v772_v44, %v1039_v19  ;;  %v545_v54 = vmax.f32 %v519_v50, 0.0  ;;  %v584_v8 = vsel %vm411_vm3, %v553_v5, 0 }
 0x1b9   :  { %v521_v46 = vpop.f32.mrf.mxu0 }
 0x1ba   :  { %v548_v48 = vmax.f32 %v530_v45, 0.0  ;;  %v522_v49 = vadd.f32 %v1039_v19, %v521_v46  ;;  %v572_v19 = vsel %vm411_vm3, %v549_v34, 0 }
 0x1bc   :  { %v556_v51 = vpack.c.bf16 %v548_v48, %v547_v47  ;;  %v546_v52 = vmax.f32 %v522_v49, 0.0 }
 0x1be   :  { %v593_v53 = vsel %vm411_vm3, %v556_v51, 0  ;;  %v555_v56 = vpack.c.bf16 %v546_v52, %v545_v54 }
 0x1bf   :  { %774 = vmatpush3.bf16.xpose.msra.mxu1 %v593_v53 }
 0x1c0   :  { %775 = vmatprep.subr.bf16.mxu1 %v824_v16  ;;  %v590_v59 = vsel %vm411_vm3, %v555_v56, 0 }
 0x1c7   :  { %776 = vmatpush3.bf16.xpose.msra.mxu1 %v590_v59 }
 0x1c8   :  { %777 = vmatprep.subr.bf16.mxu1 %v824_v16 }
 0x1cf   :  { %778 = vmatpush3.bf16.xpose.msra.mxu1 %v587_v2 }
 0x1d0   :  { %779 = vmatprep.subr.bf16.mxu1 %v824_v16 }
 0x1d7   :  { %780 = vmatpush3.bf16.xpose.msra.mxu1 %v584_v8 }
 0x1d8   :  { %781 = vmatprep.subr.bf16.mxu1 %v824_v16 }
 0x1df   :  { %782 = vmatpush3.bf16.xpose.msra.mxu1 %v581_v14 }
 0x1e0   :  { %783 = vmatprep.subr.bf16.mxu1 %v824_v16 }
 0x1e7   :  { %784 = vmatpush3.bf16.xpose.msra.mxu1 %v578_v18 }
 0x1e8   :  { %785 = vmatprep.subr.bf16.mxu1 %v824_v16 }
 0x1ef   :  { %786 = vmatpush3.bf16.xpose.msra.mxu1 %v575_v63 }
 0x1f0   :  { %787 = vmatprep.subr.bf16.mxu1 %v824_v16 }
 0x1f7   :  { %788 = vmatpush3.bf16.xpose.msra.mxu1 %v572_v19 }
 0x1fe   :  { %790 = vmatmul.mubr.msk.bf16.vlgmr.msra.gmra.mxu1 %vm411_vm3, %v557_v20 }
 0x2be   :  { %v629_v26 = vpop.f32.mrf.mxu1 }
 0x2bf   :  { %v630_v27 = vadd.f32 %v629_v26, %v567_v25 }
 0x2c0   :  { %v791_v16 = vpop.f32.mrf.mxu1 }
 0x2c1   :  { %635 = vst [vmem:[#allocation3] sm:$0x1] %v630_v27 }
 0x2c2   :  { %v632_v28 = vpop.f32.mrf.mxu1 }
 0x2c3   :  { %813 = shalt.err (!%p810_p4)
}
 0x2c4   :  { %645 = dma.vmem_to_hbm [thread:$0]  %s643_s13, 16, %s1088_s9, [#allocation4]   ;;  %v792_v29 = vpop.f32.mrf.mxu1 }
 0x2c5   :  { %822 = dma.done.wait [#allocation4], 16  }
 0x2c6   :  { %823 = vsyncadd [#allocation4], 4294967280 }
 0x2c7   :  { %649 = vsyncpa [#allocation4], 1 }

</bundles_post_ra>
